<compile_context>
chip_gen: v6e
topology: v6e:2x2x1
jax: 0.10.0
libtpu: 0.0.40
codegen_flags: <defaults>
</compile_context>

<pallas_src>
import jax
import jax.numpy as jnp
from jax.experimental import pallas as pl
from jax.experimental.pallas import tpu as pltpu

# ---------------- synthetic ViT config (small) ----------------
B, C, H, W = 2, 3, 16, 16     # images, NCHW (PyTorch conv convention)
P = 4                         # patch size
D = 32                        # hidden size
HEADS = 4
HD = D // HEADS               # head dim
MLP = 4 * D                   # mlp hidden
DEPTH = 2                     # transformer blocks
NP = (H // P) * (W // P)      # 16 patch tokens
N = NP + 1                    # +1 CLS token
NPAD = ((N + 7) // 8) * 8     # token count padded to sublane multiple (24)
CK = C * P * P                # im2col row width
EPS = 1e-6                    # DINOv2 LayerNorm eps
BT = 2                        # images folded per grid step (amortizes weight DMA)
T = BT * NPAD                 # token-slab rows per grid step
APPROX_GELU = False           # True routes GELU to EUP (tanh approx) on v6e/v7x;
                              # kept False to match DINOv2's exact-erf GELU.


# ---------------- kernel 1: patch embed + CLS + pos embed ----------------
def patch_embed_kernel(cols_ref, convw_ref, pos_ref, o_ref):
    # cols row 0 is all-zero (CLS slot), rows >= N are sublane padding; CLS
    # embedding and conv bias are pre-folded into pos_ref, so one aligned
    # matmul + add produces the full padded token block.
    emb = jnp.dot(cols_ref[0], convw_ref[...],
                  preferred_element_type=jnp.float32)            # (NPAD, D) f32
    o_ref[0] = (emb + pos_ref[...]).astype(o_ref.dtype)


def patch_embed(cols, convw, pos):
    batch = cols.shape[0]
    return pl.pallas_call(
        patch_embed_kernel,
        out_shape=jax.ShapeDtypeStruct((batch, NPAD, D), jnp.float32),
        grid=(batch,),
        in_specs=[pl.BlockSpec((1, NPAD, CK), lambda b: (b, 0, 0)),
                  pl.BlockSpec((CK, D), lambda b: (0, 0)),
                  pl.BlockSpec((NPAD, D), lambda b: (0, 0))],
        out_specs=pl.BlockSpec((1, NPAD, D), lambda b: (b, 0, 0)),
        compiler_params=pltpu.CompilerParams(
            dimension_semantics=("parallel",)),
    )(cols, convw, pos)


# ---------------- kernel 2: transformer blocks (weights streamed per layer) ---
def dino_layer_kernel(emb_ref,
                      ln1w_ref, ln1b_ref, wqkv_ref, bqkv_ref, projw_ref, projb_ref,
                      ln2w_ref, ln2b_ref, fc1w_ref, fc1b_ref, fc2w_ref, fc2b_ref,
                      o_ref):
    """Grid = (batch_tile, layer).  o_ref holds the residual-stream state
    (BT, NPAD, D) f32 for the current batch tile; it is revisited across the
    layer axis (init at l==0, written back to HBM when the batch tile advances)."""
    l = pl.program_id(1)

    @pl.when(l == 0)
    def _():
        o_ref[...] = emb_ref[...]

    x = o_ref[...].reshape(T, D).astype(jnp.float32)             # token slab

    def layernorm(v, w_ref, b_ref):
        # one-pass stats: E[x], E[x^2]
        mu = jnp.mean(v, axis=-1, keepdims=True)
        ms = jnp.mean(v * v, axis=-1, keepdims=True)
        var = jnp.maximum(ms - mu * mu, 0.0)
        return (v - mu) * jax.lax.rsqrt(var + EPS) * w_ref[0] + b_ref[0]

    # ---------------- attention ----------------
    h = layernorm(x, ln1w_ref, ln1b_ref).astype(jnp.bfloat16)    # (T, D) bf16
    # single lane-dense QKV projection; 1/sqrt(HD) pre-folded into Q columns
    qkv = jnp.dot(h, wqkv_ref[0],
                  preferred_element_type=jnp.float32) + bqkv_ref[0]   # (T, 3D) f32

    def split_heads(z):                                          # (T, D) -> (BT*HEADS, NPAD, HD)
        z = z.reshape(BT, NPAD, HEADS, HD).transpose(0, 2, 1, 3)
        return z.reshape(BT * HEADS, NPAD, HD).astype(jnp.bfloat16)

    q = split_heads(qkv[:, :D])
    k = split_heads(qkv[:, D:2 * D])
    v = split_heads(qkv[:, 2 * D:])

    s = jnp.einsum("gqd,gkd->gqk", q, k,
                   preferred_element_type=jnp.float32)           # (BT*HEADS, NPAD, NPAD)
    # mask sublane-padding key rows (index >= N) out of the softmax
    kidx = jax.lax.broadcasted_iota(jnp.int32, (1, NPAD), 1)
    s = s + jnp.where(kidx < N, 0.0, -1e30)
    s = s - jnp.max(s, axis=-1, keepdims=True)
    e = jnp.exp(s)
    p = e * pl.reciprocal(jnp.sum(e, axis=-1, keepdims=True), approx=True)
    ctx = jnp.einsum("gqk,gkd->gqd", p.astype(jnp.bfloat16), v,
                     preferred_element_type=jnp.float32)         # (BT*HEADS, NPAD, HD)
    # head concat (XLU transpose) -> single lane-dense (T, D) @ (D, D) projection
    ctx = (ctx.reshape(BT, HEADS, NPAD, HD).transpose(0, 2, 1, 3)
              .reshape(T, D).astype(jnp.bfloat16))
    y = jnp.dot(ctx, projw_ref[0],
                preferred_element_type=jnp.float32) + projb_ref[0]
    x = x + y                                    # LayerScale 1 folded into proj

    # ---------------- MLP ----------------
    h = layernorm(x, ln2w_ref, ln2b_ref).astype(jnp.bfloat16)
    h = jnp.dot(h, fc1w_ref[0], preferred_element_type=jnp.float32) + fc1b_ref[0]
    h = jax.nn.gelu(h, approximate=APPROX_GELU)                  # f32 (v5e-safe)
    h = jnp.dot(h.astype(jnp.bfloat16), fc2w_ref[0],
                preferred_element_type=jnp.float32) + fc2b_ref[0]
    x = x + h                                    # LayerScale 2 folded into fc2

    # x_prenorm state: output of block l BEFORE the final norm
    o_ref[...] = x.reshape(BT, NPAD, D).astype(o_ref.dtype)


def vit_layers_prenorm(emb, w):
    """emb: [B, NPAD, D] f32 token state; returns x_prenorm [B, NPAD, D] f32."""
    batch = emb.shape[0]
    assert batch % BT == 0

    def layer_spec(arr):      # per-layer stacked weight, streamed along l
        return pl.BlockSpec((1,) + arr.shape[1:], lambda b, l: (l, 0, 0))

    order = ["ln1w", "ln1b", "wqkv", "bqkv", "projw", "projb",
             "ln2w", "ln2b", "fc1w", "fc1b", "fc2w", "fc2b"]
    layer_ws = [w[k] for k in order]

    in_specs = ([pl.BlockSpec((BT, NPAD, D), lambda b, l: (b, 0, 0))]
                + [layer_spec(a) for a in layer_ws])

    return pl.pallas_call(
        dino_layer_kernel,
        out_shape=jax.ShapeDtypeStruct((batch, NPAD, D), jnp.float32),
        grid=(batch // BT, DEPTH),
        in_specs=in_specs,
        out_specs=pl.BlockSpec((BT, NPAD, D), lambda b, l: (b, 0, 0)),
        compiler_params=pltpu.CompilerParams(
            dimension_semantics=("parallel", "arbitrary"),
            # Toy shapes need <1 MiB.  For real DINOv2-L re-budget per chip:
            # ~96-110 MiB on v5e/v6e (keep full-layer double buffering);
            # on v7x (64 MiB physical) tile fc1/fc2 along the MLP dim instead.
            vmem_limit_bytes=48 * 1024 * 1024),
    )(emb, *layer_ws)


# ---------------- weight prep (PyTorch layout -> kernel layout) ----------------
def prep_kernel_weights(params):
    """LayerScale + attention scale folded, lane-dense (in, out) matmul weights
    in bf16, per-layer vectors as (DEPTH, 1, X) f32 blocks."""
    # patch-embed conv weight [D, C, P, P] -> [CK, D] matching im2col column order
    convw = params["conv_w"].reshape(D, CK).T.astype(jnp.bfloat16)
    # pos table with conv bias folded in; CLS token folded into row 0; pad to NPAD
    pos_eff = params["pos"] + params["conv_b"][None, :]
    pos_eff = pos_eff.at[0, :].set(params["pos"][0] + params["cls"].reshape(D))
    pos_pad = jnp.zeros((NPAD, D), jnp.float32).at[:N].set(pos_eff.astype(jnp.float32))

    # attention scale folded into the Q columns of the fused qkv weight/bias
    # (columns ordered q|k|v, each chunk head-major/hd-minor like PyTorch's
    #  qkv.reshape(B, N, 3, heads, hd))
    scale = 1.0 / (HD ** 0.5)
    colscale = jnp.concatenate([jnp.full((D,), scale, jnp.float32),
                                jnp.ones((2 * D,), jnp.float32)])
    wqkv = (params["qkvw"] * colscale[None, None, :]).astype(jnp.bfloat16)   # (DEPTH, D, 3D)
    bqkv = (params["qkvb"] * colscale[None, :]).reshape(DEPTH, 1, 3 * D).astype(jnp.float32)

    # LayerScale folded into the output projections (weights stored (in, out), used as x @ W)
    projw = (params["projw"] * params["ls1"][:, None, :]).astype(jnp.bfloat16)  # (DEPTH, D, D)
    projb = (params["projb"] * params["ls1"]).reshape(DEPTH, 1, D).astype(jnp.float32)
    fc2w = (params["fc2w"] * params["ls2"][:, None, :]).astype(jnp.bfloat16)    # (DEPTH, MLP, D)
    fc2b = (params["fc2b"] * params["ls2"]).reshape(DEPTH, 1, D).astype(jnp.float32)

    def vec(a):               # (DEPTH, X) -> (DEPTH, 1, X) f32 (lane-aligned block)
        return a.reshape(DEPTH, 1, -1).astype(jnp.float32)

    return dict(
        convw=convw, pos=pos_pad,
        ln1w=vec(params["ln1w"]), ln1b=vec(params["ln1b"]),
        wqkv=wqkv, bqkv=bqkv,
        projw=projw, projb=projb,
        ln2w=vec(params["ln2w"]), ln2b=vec(params["ln2b"]),
        fc1w=params["fc1w"].astype(jnp.bfloat16), fc1b=vec(params["fc1b"]),
        fc2w=fc2w, fc2b=fc2b,
    )


def init_params(key):
    ks = jax.random.split(key, 12)
    nrm = lambda k, shape, s=0.02: (s * jax.random.normal(k, shape)).astype(jnp.float32)
    p = {}
    # patch embed conv weight in PyTorch layout [D, C, P, P] + bias [D]
    p["conv_w"] = nrm(ks[0], (D, C, P, P))
    p["conv_b"] = nrm(ks[1], (D,))
    p["cls"] = nrm(ks[2], (1, 1, D))
    p["pos"] = nrm(ks[3], (N, D))
    p["ln1w"] = jnp.ones((DEPTH, D), jnp.float32)
    p["ln1b"] = jnp.zeros((DEPTH, D), jnp.float32)
    p["qkvw"] = nrm(ks[4], (DEPTH, D, 3 * D))
    p["qkvb"] = nrm(ks[5], (DEPTH, 3 * D))
    p["projw"] = nrm(ks[6], (DEPTH, D, D))
    p["projb"] = nrm(ks[7], (DEPTH, D))
    p["ls1"] = jnp.full((DEPTH, D), 1e-5, jnp.float32)   # DINOv2 LayerScale init
    p["ln2w"] = jnp.ones((DEPTH, D), jnp.float32)
    p["ln2b"] = jnp.zeros((DEPTH, D), jnp.float32)
    p["fc1w"] = nrm(ks[8], (DEPTH, D, MLP))
    p["fc1b"] = nrm(ks[9], (DEPTH, MLP))
    p["fc2w"] = nrm(ks[10], (DEPTH, MLP, D))
    p["fc2b"] = nrm(ks[11], (DEPTH, D))
    p["ls2"] = jnp.full((DEPTH, D), 1e-5, jnp.float32)
    return p


def dino_vision_tower_forward(images, params, select_feature="patch"):
    """images: [B, C, H, W] float32 (NCHW).  Returns x_prenorm patch features."""
    b = images.shape[0]
    hp, wp = H // P, W // P
    # im2col (pure data movement, stride == patch size).  Token row 0 is left
    # zero (CLS slot, filled via the folded pos table); rows >= N are sublane pad.
    cols = images.reshape(b, C, hp, P, wp, P).transpose(0, 2, 4, 1, 3, 5)
    cols = cols.reshape(b, NP, CK)
    cols_pad = jnp.zeros((b, NPAD, CK), jnp.float32).at[:, 1:N].set(cols)

    w = prep_kernel_weights(params)
    emb = patch_embed(cols_pad.astype(jnp.bfloat16), w["convw"], w["pos"])   # [B, NPAD, D]
    x_prenorm = vit_layers_prenorm(emb, w)                                   # [B, NPAD, D]

    # --- feature_select (drop pad rows, then CLS handling) ---
    if select_feature == "patch":
        feats = x_prenorm[:, 1:N]
    elif select_feature == "cls_patch":
        feats = x_prenorm[:, :N]
    else:
        raise ValueError(select_feature)
    return feats.astype(images.dtype)
    # TODO(synk): HF CLIPVisionModel / CLIPImageProcessor / torch.hub checkpoint
    # loading in load_model() is I/O plumbing, not compute — intentionally omitted.


if __name__ == "__main__":
    key = jax.random.PRNGKey(0)
    pkey, xkey = jax.random.split(key)
    params = init_params(pkey)
    images = jax.random.normal(xkey, (B, C, H, W), dtype=jnp.float32)

    feats = dino_vision_tower_forward(images, params, select_feature="patch")
    feats = jax.block_until_ready(feats)

    assert feats.shape == (B, NP, D), feats.shape
    assert bool(jnp.all(jnp.isfinite(feats)))
    print("KERNEL_OK")
</pallas_src>

<mosaic_0001>
module attributes {stable_mosaic.version = 11 : i64} {
  func.func @patch_embed_kernel(%arg0: i32, %arg1: memref<1x24x48xbf16, #tpu.memory_space<vmem>>, %arg2: memref<48x32xbf16, #tpu.memory_space<vmem>>, %arg3: memref<24x32xf32, #tpu.memory_space<vmem>>, %arg4: memref<1x24x32xf32, #tpu.memory_space<vmem>>) attributes {dimension_semantics = [#tpu.dimension_semantics<parallel>], iteration_bounds = array<i64: 2>, scalar_prefetch = 0 : i64, scratch_operands = 0 : i64, tpu.core_type = #tpu.core_type<tc>, window_params = [{transform_indices = @transform_0, window_bounds = array<i64: 1, 24, 48>}, {pipeline_mode = #tpu.pipeline_mode<synchronous>, transform_indices = @transform_1, window_bounds = array<i64: 48, 32>}, {pipeline_mode = #tpu.pipeline_mode<synchronous>, transform_indices = @transform_2, window_bounds = array<i64: 24, 32>}, {transform_indices = @transform_3, window_bounds = array<i64: 1, 24, 32>}]} {
    %c0 = arith.constant 0 : index
    %c0_0 = arith.constant 0 : index
    %c0_1 = arith.constant 0 : index
    %0 = vector.load %arg1[%c0, %c0_0, %c0_1] : memref<1x24x48xbf16, #tpu.memory_space<vmem>>, vector<1x24x48xbf16>
    %1 = vector.shape_cast %0 : vector<1x24x48xbf16> to vector<24x48xbf16>
    %c0_2 = arith.constant 0 : index
    %c0_3 = arith.constant 0 : index
    %2 = vector.load %arg2[%c0_2, %c0_3] : memref<48x32xbf16, #tpu.memory_space<vmem>>, vector<48x32xbf16>
    %cst = arith.constant dense<0.000000e+00> : vector<24x32xf32>
    %3 = tpu.matmul %1, %2, %cst {dimension_numbers = #tpu.dot_dimension_numbers<[1], [0], [0], [1], [0, 0, 1, 1], [], []>} : vector<24x48xbf16>, vector<48x32xbf16>, vector<24x32xf32> -> vector<24x32xf32>
    %c0_4 = arith.constant 0 : index
    %c0_5 = arith.constant 0 : index
    %4 = vector.load %arg3[%c0_4, %c0_5] : memref<24x32xf32, #tpu.memory_space<vmem>>, vector<24x32xf32>
    %5 = arith.addf %3, %4 : vector<24x32xf32>
    %c0_6 = arith.constant 0 : index
    %c0_7 = arith.constant 0 : index
    %c0_8 = arith.constant 0 : index
    %6 = vector.load %arg4[%c0_6, %c0_7, %c0_8] : memref<1x24x32xf32, #tpu.memory_space<vmem>>, vector<1x24x32xf32>
    %7 = vector.shape_cast %6 : vector<1x24x32xf32> to vector<24x32xf32>
    %8 = vector.shape_cast %5 : vector<24x32xf32> to vector<1x24x32xf32>
    tpu.vector_store %arg4[%c0_6, %c0_7, %c0_8], %8 {strides = array<i32>} : memref<1x24x32xf32, #tpu.memory_space<vmem>>, vector<1x24x32xf32>,
    return
  }
  func.func @transform_0(%arg0: i32) -> (i32, i32, i32) {
    %c0_i32 = arith.constant 0 : i32
    %c0_i32_0 = arith.constant 0 : i32
    %c0_i32_1 = arith.constant 0 : i32
    return %arg0, %c0_i32, %c0_i32_0 : i32, i32, i32
  }
  func.func @transform_1(%arg0: i32) -> (i32, i32) {
    %c0_i32 = arith.constant 0 : i32
    %c0_i32_0 = arith.constant 0 : i32
    %c0_i32_1 = arith.constant 0 : i32
    return %c0_i32, %c0_i32_0 : i32, i32
  }
  func.func @transform_2(%arg0: i32) -> (i32, i32) {
    %c0_i32 = arith.constant 0 : i32
    %c0_i32_0 = arith.constant 0 : i32
    %c0_i32_1 = arith.constant 0 : i32
    return %c0_i32, %c0_i32_0 : i32, i32
  }
  func.func @transform_3(%arg0: i32) -> (i32, i32, i32) {
    %c0_i32 = arith.constant 0 : i32
    %c0_i32_0 = arith.constant 0 : i32
    %c0_i32_1 = arith.constant 0 : i32
    return %arg0, %c0_i32, %c0_i32_0 : i32, i32, i32
  }
}

</mosaic_0001>

<bundles_post_ra>
// kernel: tpu_custom_call.1
= control target key start
LH: loop header
LB: loop body
LE: loop exit
PB: predicated region body
PF: predicated region fallthrough
CT: control target
= control target key end

     0   :  { %8 = vsyncpa [#allocation3], 0  ;;  %s714_s0 = inlined_call_operand.vmem [shape: bf16[2,24,48], index: 0, kind: input, shape index: {}]   ;;  %s715_s1 = inlined_call_operand.vmem [shape: bf16[48,32], index: 1, kind: input, shape index: {}]   ;;  %s716_s2 = inlined_call_operand.hbm [shape: f32[24,32], index: 2, kind: input, shape index: {}]   ;;  %s717_s3 = inlined_call_operand.hbm [shape: f32[2,24,32], index: 3, kind: output, shape index: {}]  }
   0x1   :  { %9 = vsyncpa [#allocation4], 0 }
   0x2   :  { %11 = vsyncpa [#allocation4 + $0x1], 0  ;;  %s582_s12 = smov 0   ;;  %s584_s13 = smov 0  }
   0x3   :  { %s586_s14 = smov 0   ;;  %s588_s15 = smov 0  }
   0x4 LB: > { %s603_s16 = sadd.s32 4294967295, %s554_s15   ;;  %s370_s17 = sadd.s32 4294967294, %s554_s15   ;;  %s554_s15 = sphi %s588_s15, %s725_s15   ;;  %s550_s14 = sphi %s586_s14, %s724_s14   ;;  %s546_s13 = sphi %s584_s13, %s723_s13   ;;  %s542_s12 = sphi %s582_s12, %s722_s12  }
   0x5   : > { %s607_s18 = sadd.s32 1, %s554_s15   ;;  %s92_s19 = sadd.s32 1, %s550_s14 }
   0x6   : > { %s89_s20 = ssub.s32 %s554_s15, %s607_s18  ;;  %p102_p0 = scmp.ne.s32.totalorder %s550_s14, %s546_s13 }
   0x7   : > { %p90_p1 = scmp.eq.s32.totalorder %s89_s20, 0  ;;  %p103_p2 = scmp.eq.s32.totalorder %s603_s16, 1 }
   0x8   : > { %p108_p3 = scmp.ne.s32.totalorder %s546_s13, %s542_s12  ;;  %p109_p4 = scmp.eq.s32.totalorder %s370_s17, 1 }
   0x9   : > { %s618_s21 = scalar_select %p90_p1, %s550_s14, %s92_s19  }
   0xa   : > { %p620_p5 = por %p103_p2, %p102_p0  ;;  %p624_p6 = por %p109_p4, %p108_p3 }
   0xb   : > { %p371_p7 = scmp.ge.s32.totalorder %s554_s15, 1  ;;  %p116_p8 = scmp.lt.s32.totalorder %s554_s15, 3 }
   0xc   : > { %s719_s23 = scalar_select %p624_p6, 1, 0 }
   0xd   : > { %p419_p9 = scmp.eq.s32.totalorder %s603_s16, 0  ;;  %p631_p10 = pnand %p371_p7, %p116_p8 }
   0xe   : > { %s556_s25 = smov [#allocation2]  }
   0xf   : > { %s131_s26 = sshll.u32 %s556_s25, 4  ;;  %p411_p11 = pneg %p631_p10  ;;  %s132_s26 = int_to_ptr.vmem [resolvable:$true] %s131_s26 }
  0x10   : > { %s475_s27 = scalar_lea.vmem %s132_s26, 384  ;;  %p483_p3 = scmp.lt.s32.totalorder %s132_s26, %s132_s26 }
  0x11   : > { %p412_p12 = pnand %p419_p9, %p411_p11  ;;  %p476_p0 = scmp.ne.s32.totalorder %s132_s26, %s475_s27 }
  0x12   : > { %p484_p4 = scmp.lt.s32.totalorder %s475_s27, %s475_s27 }
  0x13   : > { %p466_p13 = pneg %p412_p12 }
  0x14   : > { %p485_p6 = por %p484_p4, %p483_p3 }
  0x15   : > { %p478_p1 = pnand %p476_p0, %p466_p13 }
  0x17   : > { %p479_p2 = pneg %p478_p1 }
  0x19   : > { %p486_p7 = pnand %p485_p6, %p479_p2 }
  0x1b   : > { %489 = shalt.err (!%p486_p7)
}
  0x1c   : > { %s557_s28 = smov 128   ;;  %s558_s29 = smov 8  }
  0x1d   : > { %414 = dma.hbm_to_vmem [thread:$0]  (!%p412_p12), %s716_s2, 384, %s132_s26, [#allocation3], %s557_s28, %s557_s28, %s558_s29  }
  0x1e   : > { %155 = sbr.rel (%p631_p10) target bundleno = 264 (0x108), region = 32 }
  0x23   : > { %533 = dma.done.wait (%p419_p9), [#allocation3], 384  }
  0x24   : > { %535 = vsyncadd (%p419_p9), [#allocation3], 4294966912  ;;  %p179_p8 = scmp.lt.s32.totalorder %s603_s16, 1  ;;  %v459_v0 = vld [vmem:[%s715_s1 + $0x10] sm:$0xff]   ;;  %v460_v1 = vld [vmem:[%s715_s1 + $0x8] sm:$0xff]   ;;  %vm223_vm0 = vcmask 392192  }
  0x25   : > { %392 = vmatprep.subr.bf16.mxu0 %v459_v0  ;;  %v461_v2 = vld [vmem:[%s715_s1] sm:$0xff]   ;;  %s176_s25 = sand.u32 1, %s546_s13   ;;  %v196_v5 = vld [vmem:[#allocation2 + $0x10] sm:$0xff]  ;;  %vm278_vm1 = vcmask 261120   ;;  %s404_s27 = smul.u32 384, %s603_s16  ;;  %v195_v12 = vld [vmem:[#allocation2 + $0x8] sm:$0xff] }
  0x26   : > { %s180_s5 = scalar_select %p179_p8, %s603_s16, 1  ;;  %393 = vmatpush3.bf16.msra.mxu0 %v459_v0  ;;  %v194_v7 = vld [vmem:[#allocation2] sm:$0xff] }
  0x27   : > { %394 = vmatprep.subr.bf16.mxu0 %v460_v1  ;;  %s402_s26 = smul.u32 24, %s176_s25  ;;  %s671_s16 = scalar_lea.hbm %s717_s3, %s404_s27 }
  0x28   : > { %s403_s6 = smul.u32 12, %s180_s5  ;;  %s674_s5 = scalar_lea.sflag [#allocation4], %s176_s25 }
  0x29   : > { %s178_s28 = scalar_lea.vmem [#allocation5], %s402_s26  ;;  %s559_s7 = smov [#allocation5]  }
  0x2a   : > { %s183_s19 = scalar_lea.vmem %s714_s0, %s403_s6  ;;  %395 = vmatpush3.bf16.msra.mxu0 %v460_v1  ;;  %s296_s29 = sshll.u32 %s178_s28, 4  ;;  %s666_s29 = int_to_ptr.vmem [resolvable:$true] %s296_s29 }
  0x2b   : > { %v462_v3 = vld [vmem:[%s183_s19] sm:$0xff]   ;;  %396 = vmatprep.subr.bf16.mxu0 %v461_v2  ;;  %v463_v4 = vld [vmem:[%s183_s19 + $0x8] ss:$0 sps:$4 sm:$0xff]   ;;  %s490_s6 = scalar_lea.vmem %s666_s29, 384  ;;  %s494_s8 = sshll.u32 %s559_s7, 4  ;;  %s495_s8 = int_to_ptr.vmem [resolvable:$false] %s494_s8 }
  0x2c   : > { %398 = vmatprep.mubr.msk.bf16.mxu0 %vm223_vm0, %v462_v3  ;;  %p491_p6 = scmp.ne.s32.totalorder %s666_s29, %s490_s6  ;;  %s496_s9 = scalar_lea.vmem %s495_s8, 768 }
  0x2d   : > { %p497_p11 = scmp.lt.s32.totalorder %s666_s29, %s495_s8  ;;  %p498_p12 = scmp.lt.s32.totalorder %s496_s9, %s490_s6 }
  0x2e   : > { %397 = vmatpush3.bf16.msra.mxu0 %v461_v2  ;;  %p492_p9 = pnand %p491_p6, %p620_p5 }
  0x2f   : > { %p499_p13 = por %p498_p12, %p497_p11 }
  0x30   : > { %p493_p10 = pneg %p492_p9 }
  0x31   : > { %399 = vmatmul.mubr.msk.bf16.vlgmr.msra.gmra.mxu0 %vm223_vm0, %v463_v4 }
  0x32   : > { %p500_p0 = pnand %p499_p13, %p493_p10 }
  0xf1   : > { %v400_v6 = vpop.f32.mrf.mxu0 }
  0xf2   : > { %v273_v8 = vadd.f32 %v400_v6, %v196_v5 }
  0xf3   : > { %v264_v9 = vpop.f32.mrf.mxu0 }
  0xf4   : > { %281 = vst.msk [vmem:[%s178_s28 + $0x10] sm:$0xff] %vm278_vm1, %v273_v8  ;;  %v265_v10 = vadd.f32 %v264_v9, %v194_v7 }
  0xf5   : > { %v401_v11 = vpop.f32.mrf.mxu0 }
  0xf6   : > { %279 = vst.msk [vmem:[%s178_s28] sm:$0xff] %vm278_vm1, %v265_v10 }
  0xf7   : > { %v267_v13 = vpop.f32.mrf.mxu0 }
  0xf8   : > { %v268_v14 = vadd.f32 %v267_v13, %v195_v12 }
  0xfa   : > { %280 = vst.msk [vmem:[%s178_s28 + $0x8] sm:$0xff] %vm278_vm1, %v268_v14 }
  0xfb   : > { %503 = shalt.err (!%p500_p0)
}
  0xfc   : > { %s504_s10 = scalar_lea.hbm %s671_s16, 384  ;;  %s508_s19 = scalar_lea.hbm %s717_s3, 768 }
  0xfd   : > { %p505_p1 = scmp.ne.s32.totalorder %s671_s16, %s504_s10  ;;  %p509_p4 = scmp.lt.s32.totalorder %s671_s16, %s717_s3 }
  0xfe   : > { %p510_p7 = scmp.lt.s32.totalorder %s508_s19, %s504_s10 }
  0xff   : > { %p506_p2 = pnand %p505_p1, %p620_p5 }
 0x100   : > { %p511_p8 = por %p510_p7, %p509_p4 }
 0x101   : > { %p507_p3 = pneg %p506_p2 }
 0x103   : > { %p512_p6 = pnand %p511_p8, %p507_p3 }
 0x105   : > { %515 = shalt.err (!%p512_p6)
}
 0x106   : > { %s560_s25 = smov 128   ;;  %s561_s26 = smov 8  }
 0x107   : > { %409 = dma.vmem_to_hbm [thread:$0]  (%p620_p5), %s666_s29, 384, %s671_s16, %s674_s5, %s560_s25, %s560_s25, %s561_s26  }
 0x108 PF: > { %p421_p9 = scmp.ge.s32.totalorder %s554_s15, 2  ;;  %s311_s27 = sand.u32 1, %s542_s12  }
 0x109   : > { %p721_p10 = scmp.ne.s32.totalorder %s719_s23, 0  ;;  %s312_s28 = scalar_lea.sflag [#allocation4], %s311_s27 }
 0x10b   : > { %p416_p11 = pnand %p421_p9, %p721_p10 }
 0x10d   : > { %p417_p12 = pneg %p416_p11 }
 0x10f   : > { %537 = dma.done.wait (%p417_p12), %s312_s28, 384  }
 0x110   : > { %539 = vsyncadd (%p417_p12), %s312_s28, 4294966912  ;;  %p14_p13 = scmp.ge.s32.totalorder %s607_s18, 4   ;;  %s722_s12 = smov %s546_s13 }
 0x111   : > { %s723_s13 = smov %s550_s14  ;;  %s724_s14 = smov %s618_s21 }
 0x112   : > { %s725_s15 = smov %s607_s18  ;;  %16 = sbr.rel (!%p14_p13) target bundleno = 4 (0x4), region = 72 }
 0x117   :  { %317 = vsyncpa [#allocation3], 1 }
 0x118   :  { %319 = vsyncpa [#allocation3 + $0x1], 1 }
 0x119   :  { %320 = vsyncpa [#allocation4], 1 }
 0x11a   :  { %322 = vsyncpa [#allocation4 + $0x1], 1 }

</bundles_post_ra>
